<compile_context>
chip_gen: v7x
topology: tpu7x:2x2x1
jax: 0.10.0
libtpu: 0.0.40
codegen_flags: <defaults>
</compile_context>

<pallas_src>
import functools
import math

import jax
import jax.numpy as jnp
from jax.experimental import pallas as pl
from jax.experimental.pallas import tpu as pltpu


# ----------------------------- helpers --------------------------------------
def _round_up(x, m):
    return ((x + m - 1) // m) * m


def _apply_activation(x, name):
    if name is None:
        return x
    name = name.lower()
    if name == "relu":
        return jnp.maximum(x, 0.0)
    if name == "gelu":
        # PyTorch nn.GELU default is the exact (erf) form.
        return jax.nn.gelu(x, approximate=False)
    if name == "tanh":
        return jnp.tanh(x)
    if name == "sigmoid":
        return jax.nn.sigmoid(x)
    if name == "leakyrelu":
        return jnp.where(x >= 0.0, x, 0.01 * x)
    # Unknown names fall back to ReLU, matching the PyTorch dict.get(..., nn.ReLU()).
    return jnp.maximum(x, 0.0)


# ------------------------------- kernel --------------------------------------
def _fused_mlp_kernel(*refs, n_layers, activations):
    """One (tm, N_out) output tile: the whole MLP fused, weights VMEM-resident.

    refs = (x_ref, w0_ref, b0_ref, ..., w{L-1}_ref, b{L-1}_ref, o_ref)
    """
    x_ref = refs[0]
    o_ref = refs[1 + 2 * n_layers]

    h = x_ref[...]
    for l in range(n_layers):
        w_ref = refs[1 + 2 * l]
        b_ref = refs[2 + 2 * l]
        # MXU matmul with f32 accumulation; bias + activation fused in the
        # per-layer epilogue.  The intermediate never leaves VMEM/vregs.
        h = jnp.dot(h.astype(w_ref.dtype), w_ref[...],
                    preferred_element_type=jnp.float32)
        h = _apply_activation(h + b_ref[...].astype(jnp.float32), activations[l])

    o_ref[...] = h.astype(o_ref.dtype)


# --------------------------- param preparation --------------------------------
def prepare_mlp_params(params):
    """Pad weights/biases once, OUTSIDE the hot path.

    Columns are padded to a multiple of 128 (lane-dense MXU feeds / unmasked
    stores); rows of layer l>0 are padded to match the previous layer's padded
    width.  Zero padding is exact: padded activation columns multiply
    zero-padded weight rows, and padded output columns are sliced off.
    """
    padded = []
    for l, (w, b) in enumerate(params):
        k, n = w.shape
        n_p = _round_up(n, 128)
        k_p = k if l == 0 else _round_up(k, 128)
        wp = jnp.pad(w, ((0, k_p - k), (0, n_p - n)))
        bp = jnp.pad(b, (0, n_p - n)).reshape(1, n_p)
        padded.append((wp, bp))
    return tuple(padded)


# ------------------------------ MLP forward -----------------------------------
@functools.partial(
    jax.jit,
    static_argnames=("out_dim", "activation", "last_activation", "max_tm"),
)
def mlp_forward(x, padded_params, out_dim, activation="relu",
                last_activation=None, max_tm=256):
    """Fused MLP forward: y = act_L(... act_1(x @ W1 + b1) ... @ WL + bL).

    x: (M, K) float.  padded_params: output of prepare_mlp_params.
    Returns (M, out_dim) in x.dtype.
    """
    M, K = x.shape
    n_layers = len(padded_params)
    last_act = last_activation if last_activation else activation
    activations = tuple(
        (last_act if l == n_layers - 1 else activation) for l in range(n_layers)
    )

    # Pad rows only to the 8-sublane multiple, never to a full tile; the grid
    # uses cdiv so a ragged last M-block is masked on writeback.
    Mp = _round_up(max(M, 1), 8)
    xp = x if Mp == M else jnp.pad(x, ((0, Mp - M), (0, 0)))
    tm = min(max_tm, Mp)
    grid = (pl.cdiv(Mp, tm),)

    n_out_p = padded_params[-1][0].shape[1]

    # x block: last dim == full K (no K padding needed, even for K < 128).
    in_specs = [pl.BlockSpec((tm, K), lambda i: (i, 0))]
    flat_args = [xp]
    for w, b in padded_params:
        in_specs.append(pl.BlockSpec(w.shape, lambda i: (0, 0)))  # VMEM-resident
        in_specs.append(pl.BlockSpec(b.shape, lambda i: (0, 0)))  # VMEM-resident
        flat_args.extend([w, b])

    # Advisory cost model, computed from the padded shapes actually processed.
    flops = 0
    transcendentals = 0
    bytes_accessed = xp.size * xp.dtype.itemsize
    for l, (w, b) in enumerate(padded_params):
        kp, np_ = w.shape
        flops += 2 * Mp * kp * np_ + 2 * Mp * np_
        act_l = (activations[l] or "").lower()
        if act_l not in ("", "relu", "leakyrelu"):
            transcendentals += Mp * np_
        bytes_accessed += (w.size + b.size) * w.dtype.itemsize
    bytes_accessed += Mp * n_out_p * xp.dtype.itemsize

    kernel = functools.partial(
        _fused_mlp_kernel, n_layers=n_layers, activations=activations
    )

    out_p = pl.pallas_call(
        kernel,
        out_shape=jax.ShapeDtypeStruct((Mp, n_out_p), x.dtype),
        grid_spec=pltpu.PrefetchScalarGridSpec(
            num_scalar_prefetch=0,
            grid=grid,
            in_specs=in_specs,
            out_specs=pl.BlockSpec((tm, n_out_p), lambda i: (i, 0)),
        ),
        compiler_params=pltpu.CompilerParams(
            dimension_semantics=("parallel",),   # M-blocks shard across TCs (v7x)
            vmem_limit_bytes=32 << 20,           # safe ceiling on v5e/v6e/v7x
        ),
        cost_estimate=pl.CostEstimate(
            flops=flops,
            transcendentals=transcendentals,
            bytes_accessed=bytes_accessed,
        ),
    )(*flat_args)

    return out_p[:M, :out_dim]


# ------------------------------- reference ------------------------------------
def _reference_mlp(x, params, activation="relu", last_activation=None):
    last_act = last_activation if last_activation else activation
    h = x
    n = len(params)
    for i, (w, b) in enumerate(params):
        h = h @ w + b
        h = _apply_activation(h, last_act if i == n - 1 else activation)
    return h


if __name__ == "__main__":
    key = jax.random.PRNGKey(0)

    B = 2
    input_shape = 32
    dims = (100, 50)
    activation = "relu"
    last_activation = None  # -> falls back to `activation` (ReLU), as in PyTorch

    keys = jax.random.split(key, 2 * len(dims) + 1)
    x = jax.random.normal(keys[0], (B, input_shape), dtype=jnp.float32)

    # Deterministic nn.Linear-style init: U(-1/sqrt(in_dim), 1/sqrt(in_dim)).
    params = []
    in_dim = input_shape
    for i, d in enumerate(dims):
        bound = 1.0 / math.sqrt(in_dim)
        w = jax.random.uniform(keys[2 * i + 1], (in_dim, d), jnp.float32, -bound, bound)
        b = jax.random.uniform(keys[2 * i + 2], (d,), jnp.float32, -bound, bound)
        params.append((w, b))
        in_dim = d

    # Pad params once, outside the hot path.
    padded_params = prepare_mlp_params(params)

    out = mlp_forward(
        x, padded_params, out_dim=dims[-1],
        activation=activation, last_activation=last_activation,
    )
    out = jax.block_until_ready(out)

    ref = _reference_mlp(x, params, activation=activation,
                         last_activation=last_activation)

    assert out.shape == (B, dims[-1]), out.shape
    assert jnp.allclose(out, ref, atol=1e-5, rtol=1e-5)

    print("KERNEL_OK")
</pallas_src>

<mosaic_0001>
module attributes {stable_mosaic.version = 11 : i64} {
  func.func @_fused_mlp_kernel(%arg0: i32, %arg1: memref<8x32xf32, #tpu.memory_space<vmem>>, %arg2: memref<32x128xf32, #tpu.memory_space<vmem>>, %arg3: memref<1x128xf32, #tpu.memory_space<vmem>>, %arg4: memref<128x128xf32, #tpu.memory_space<vmem>>, %arg5: memref<1x128xf32, #tpu.memory_space<vmem>>, %arg6: memref<8x128xf32, #tpu.memory_space<vmem>>) attributes {dimension_semantics = [#tpu.dimension_semantics<parallel>], iteration_bounds = array<i64: 1>, scalar_prefetch = 0 : i64, scratch_operands = 0 : i64, tpu.core_type = #tpu.core_type<tc>, window_params = [{transform_indices = @transform_0, window_bounds = array<i64: 8, 32>}, {pipeline_mode = #tpu.pipeline_mode<synchronous>, transform_indices = @transform_1, window_bounds = array<i64: 32, 128>}, {pipeline_mode = #tpu.pipeline_mode<synchronous>, transform_indices = @transform_2, window_bounds = array<i64: 1, 128>}, {pipeline_mode = #tpu.pipeline_mode<synchronous>, transform_indices = @transform_3, window_bounds = array<i64: 128, 128>}, {pipeline_mode = #tpu.pipeline_mode<synchronous>, transform_indices = @transform_4, window_bounds = array<i64: 1, 128>}, {transform_indices = @transform_5, window_bounds = array<i64: 8, 128>}]} {
    %c0 = arith.constant 0 : index
    %c0_0 = arith.constant 0 : index
    %0 = vector.load %arg1[%c0, %c0_0] : memref<8x32xf32, #tpu.memory_space<vmem>>, vector<8x32xf32>
    %c0_1 = arith.constant 0 : index
    %c0_2 = arith.constant 0 : index
    %1 = vector.load %arg2[%c0_1, %c0_2] : memref<32x128xf32, #tpu.memory_space<vmem>>, vector<32x128xf32>
    %cst = arith.constant dense<0.000000e+00> : vector<8x128xf32>
    %2 = tpu.matmul %0, %1, %cst {dimension_numbers = #tpu.dot_dimension_numbers<[1], [0], [0], [1], [0, 0, 1, 1], [], []>} : vector<8x32xf32>, vector<32x128xf32>, vector<8x128xf32> -> vector<8x128xf32>
    %c0_3 = arith.constant 0 : index
    %c0_4 = arith.constant 0 : index
    %3 = vector.load %arg3[%c0_3, %c0_4] : memref<1x128xf32, #tpu.memory_space<vmem>>, vector<1x128xf32>
    %4 = vector.broadcast %3 : vector<1x128xf32> to vector<8x128xf32>
    %5 = arith.addf %2, %4 : vector<8x128xf32>
    %cst_5 = arith.constant 0.000000e+00 : f32
    %6 = vector.broadcast %cst_5 : f32 to vector<8x128xf32>
    %7 = arith.maximumf %5, %6 : vector<8x128xf32>
    %c0_6 = arith.constant 0 : index
    %c0_7 = arith.constant 0 : index
    %8 = vector.load %arg4[%c0_6, %c0_7] : memref<128x128xf32, #tpu.memory_space<vmem>>, vector<128x128xf32>
    %cst_8 = arith.constant dense<0.000000e+00> : vector<8x128xf32>
    %9 = tpu.matmul %7, %8, %cst_8 {dimension_numbers = #tpu.dot_dimension_numbers<[1], [0], [0], [1], [0, 0, 1, 1], [], []>} : vector<8x128xf32>, vector<128x128xf32>, vector<8x128xf32> -> vector<8x128xf32>
    %c0_9 = arith.constant 0 : index
    %c0_10 = arith.constant 0 : index
    %10 = vector.load %arg5[%c0_9, %c0_10] : memref<1x128xf32, #tpu.memory_space<vmem>>, vector<1x128xf32>
    %11 = vector.broadcast %10 : vector<1x128xf32> to vector<8x128xf32>
    %12 = arith.addf %9, %11 : vector<8x128xf32>
    %cst_11 = arith.constant 0.000000e+00 : f32
    %13 = vector.broadcast %cst_11 : f32 to vector<8x128xf32>
    %14 = arith.maximumf %12, %13 : vector<8x128xf32>
    %c0_12 = arith.constant 0 : index
    %c0_13 = arith.constant 0 : index
    %15 = vector.load %arg6[%c0_12, %c0_13] : memref<8x128xf32, #tpu.memory_space<vmem>>, vector<8x128xf32>
    tpu.vector_store %arg6[%c0_12, %c0_13], %14 {strides = array<i32>} : memref<8x128xf32, #tpu.memory_space<vmem>>, vector<8x128xf32>,
    return
  }
  func.func @transform_0(%arg0: i32) -> (i32, i32) {
    %c0_i32 = arith.constant 0 : i32
    %c0_i32_0 = arith.constant 0 : i32
    return %arg0, %c0_i32 : i32, i32
  }
  func.func @transform_1(%arg0: i32) -> (i32, i32) {
    %c0_i32 = arith.constant 0 : i32
    %c0_i32_0 = arith.constant 0 : i32
    %c0_i32_1 = arith.constant 0 : i32
    return %c0_i32, %c0_i32_0 : i32, i32
  }
  func.func @transform_2(%arg0: i32) -> (i32, i32) {
    %c0_i32 = arith.constant 0 : i32
    %c0_i32_0 = arith.constant 0 : i32
    %c0_i32_1 = arith.constant 0 : i32
    return %c0_i32, %c0_i32_0 : i32, i32
  }
  func.func @transform_3(%arg0: i32) -> (i32, i32) {
    %c0_i32 = arith.constant 0 : i32
    %c0_i32_0 = arith.constant 0 : i32
    %c0_i32_1 = arith.constant 0 : i32
    return %c0_i32, %c0_i32_0 : i32, i32
  }
  func.func @transform_4(%arg0: i32) -> (i32, i32) {
    %c0_i32 = arith.constant 0 : i32
    %c0_i32_0 = arith.constant 0 : i32
    %c0_i32_1 = arith.constant 0 : i32
    return %c0_i32, %c0_i32_0 : i32, i32
  }
  func.func @transform_5(%arg0: i32) -> (i32, i32) {
    %c0_i32 = arith.constant 0 : i32
    %c0_i32_0 = arith.constant 0 : i32
    return %arg0, %c0_i32 : i32, i32
  }
}

</mosaic_0001>

<bundles_post_ra>
// kernel: mlp_forward.1
= control target key start
LH: loop header
LB: loop body
LE: loop exit
PB: predicated region body
PF: predicated region fallthrough
CT: control target
= control target key end

     0   :  { %10 = vsyncpa [#allocation3], 0  ;;  %s465_s0 = inlined_call_operand.vmem [shape: f32[8,32], index: 0, kind: input, shape index: {}]   ;;  %s466_s1 = inlined_call_operand.hbm [shape: f32[32,128], index: 1, kind: input, shape index: {}]   ;;  %s467_s2 = inlined_call_operand.vmem [shape: f32[1,128], index: 2, kind: input, shape index: {}]   ;;  %s468_s3 = inlined_call_operand.hbm [shape: f32[128,128], index: 3, kind: input, shape index: {}]   ;;  %s469_s4 = inlined_call_operand.vmem [shape: f32[1,128], index: 4, kind: input, shape index: {}]   ;;  %s470_s5 = inlined_call_operand.vmem [shape: f32[8,128], index: 5, kind: output, shape index: {}]  }
   0x1   :  { %11 = vsyncpa [#allocation5], 0  ;;  %s392_s18 = smov [#allocation2]   ;;  %s344_s22 = scalar_lea.hbm %s466_s1, 512 }
   0x2   :  { %s19_s19 = sshll.u32 %s392_s18, 4  ;;  %p345_p0 = scmp.ne.s32.totalorder %s466_s1, %s344_s22  ;;  %s20_s19 = int_to_ptr.vmem [resolvable:$true] %s19_s19 }
   0x3   :  { %p348_p1 = scmp.lt.u32.totalorder %s344_s22, %s466_s1 }
   0x5   :  { %p350_p2 = pnand %p348_p1, %p345_p0 }
   0x7   :  { %353 = shalt.err (!%p350_p2)
}
   0x8   :  { %s354_s27 = scalar_lea.vmem %s20_s19, 512  ;;  %p359_p4 = scmp.lt.s32.totalorder %s20_s19, %s20_s19 }
   0x9   :  { %p355_p3 = scmp.ne.s32.totalorder %s20_s19, %s354_s27  ;;  %p360_p5 = scmp.lt.s32.totalorder %s354_s27, %s354_s27 }
   0xb   :  { %p361_p6 = por %p360_p5, %p359_p4 }
   0xd   :  { %p362_p7 = pnand %p361_p6, %p355_p3 }
   0xf   :  { %365 = shalt.err (!%p362_p7)
}
  0x10   :  { %s393_s28 = smov 128   ;;  %s394_s29 = smov 8  }
  0x11   :  { %25 = dma.hbm_to_vmem [thread:$0]  %s466_s1, 512, %s20_s19, [#allocation3], %s393_s28, %s393_s28, %s394_s29  }
  0x12   :  { %s395_s7 = smov [#allocation4]   ;;  %s366_s11 = scalar_lea.hbm %s468_s3, 2048 }
  0x13   :  { %s33_s8 = sshll.u32 %s395_s7, 4  ;;  %p367_p8 = scmp.ne.s32.totalorder %s468_s3, %s366_s11  ;;  %s34_s8 = int_to_ptr.vmem [resolvable:$true] %s33_s8 }
  0x14   :  { %p370_p9 = scmp.lt.u32.totalorder %s366_s11, %s468_s3 }
  0x16   :  { %p372_p10 = pnand %p370_p9, %p367_p8 }
  0x18   :  { %375 = shalt.err (!%p372_p10)
}
  0x19   :  { %s376_s16 = scalar_lea.vmem %s34_s8, 2048  ;;  %p381_p12 = scmp.lt.s32.totalorder %s34_s8, %s34_s8 }
  0x1a   :  { %p377_p11 = scmp.ne.s32.totalorder %s34_s8, %s376_s16  ;;  %p382_p13 = scmp.lt.s32.totalorder %s376_s16, %s376_s16 }
  0x1c   :  { %p383_p0 = por %p382_p13, %p381_p12 }
  0x1e   :  { %p384_p1 = pnand %p383_p0, %p377_p11 }
  0x20   :  { %387 = shalt.err (!%p384_p1)
}
  0x21   :  { %39 = dma.hbm_to_vmem [thread:$0]  %s468_s3, 2048, %s34_s8, [#allocation5], %s393_s28, %s393_s28, %s394_s29  }
  0x22   :  { %388 = dma.done.wait [#allocation3], 512  }
  0x23   :  { %389 = vsyncadd [#allocation3], 4294966784 }
  0x24   :  { %390 = dma.done.wait [#allocation5], 2048  }
  0x25   :  { %391 = vsyncadd [#allocation5], 4294965248  ;;  %v396_v0 = vmov 0.0|0.0   ;;  %vm397_vm0 = vmmov 0   ;;  %v398_v1 = vmov 0.0   ;;  %v49_v2 = vld [vmem:[#allocation2] sm:$0xff] }
  0x26   :  { %307 = vmatprep.subr.bf16.mxu0 %v396_v0  ;;  %269 = vmatprep.mubr.msk.f32.mxu0 %vm397_vm0, %v398_v1  ;;  %v50_v3 = vld [vmem:[#allocation2 + $0x8] sm:$0xff]  ;;  %v51_v4 = vld [vmem:[#allocation2 + $0x10] sm:$0xff]  ;;  %v52_v6 = vld [vmem:[#allocation2 + $0x18] sm:$0xff]  ;;  %vm60_vm1 = vcmask 261120  }
  0x27   :  { %313 = vmatprep.subr.bf16.mxu1 %v396_v0  ;;  %304 = vmatprep.mubr.msk.f32.mxu1 %vm397_vm0, %v398_v1  ;;  %v308_v5 = vpack.c.bf16 %v50_v3, %v49_v2  ;;  %v135_v7 = vld [vmem:[#allocation4] sm:$0xff]  ;;  %v136_v8 = vld [vmem:[#allocation4 + $0x8] sm:$0xff]  ;;  %v137_v9 = vld [vmem:[#allocation4 + $0x10] sm:$0xff]  ;;  %v311_v11 = vpack.c.bf16 %v52_v6, %v51_v4 }
  0x28   :  { %v138_v10 = vld [vmem:[#allocation4 + $0x18] sm:$0xff]  ;;  %v314_v12 = vpack.c.bf16 %v136_v8, %v135_v7  ;;  %v139_v14 = vld [vmem:[#allocation4 + $0x20] sm:$0xff]  ;;  %v140_v15 = vld [vmem:[#allocation4 + $0x28] sm:$0xff] }
  0x29   :  { %309 = vmatpush3.bf16.msra.mxu0 %v308_v5  ;;  %v317_v13 = vpack.c.bf16 %v138_v10, %v137_v9  ;;  %v48_v16 = vld [vmem:[%s465_s0] sm:$0xff]  ;;  %v320_v17 = vpack.c.bf16 %v140_v15, %v139_v14  ;;  %v141_v18 = vld [vmem:[#allocation4 + $0x30] sm:$0xff]  ;;  %v142_v19 = vld [vmem:[#allocation4 + $0x38] sm:$0xff] }
  0x2a   :  { %310 = vmatprep.subr.bf16.mxu0 %v396_v0  ;;  %315 = vmatpush3.bf16.msra.mxu1 %v314_v12  ;;  %v323_v20 = vpack.c.bf16 %v142_v19, %v141_v18  ;;  %v143_v21 = vld [vmem:[#allocation4 + $0x40] sm:$0xff]  ;;  %v144_v22 = vld [vmem:[#allocation4 + $0x48] sm:$0xff]  ;;  %v145_v24 = vld [vmem:[#allocation4 + $0x50] sm:$0xff] }
  0x2b   :  { %316 = vmatprep.subr.bf16.mxu1 %v396_v0  ;;  %v326_v23 = vpack.c.bf16 %v144_v22, %v143_v21  ;;  %v146_v25 = vld [vmem:[#allocation4 + $0x58] sm:$0xff]  ;;  %v147_v27 = vld [vmem:[#allocation4 + $0x60] sm:$0xff]  ;;  %v148_v28 = vld [vmem:[#allocation4 + $0x68] sm:$0xff] }
  0x2c   :  { %v329_v26 = vpack.c.bf16 %v146_v25, %v145_v24  ;;  %v332_v29 = vpack.c.bf16 %v148_v28, %v147_v27  ;;  %v149_v30 = vld [vmem:[#allocation4 + $0x70] sm:$0xff]  ;;  %v150_v31 = vld [vmem:[#allocation4 + $0x78] sm:$0xff]  ;;  %v236_v33 = vld [vmem:[%s467_s2] ss:$0 sm:$0xff] }
  0x2d   :  { %312 = vmatpush3.bf16.msra.mxu0 %v311_v11  ;;  %v335_v32 = vpack.c.bf16 %v150_v31, %v149_v30  ;;  %v238_v38 = vld [vmem:[%s469_s4] ss:$0 sm:$0xff] }
  0x2e   :  { %318 = vmatpush3.bf16.msra.mxu1 %v317_v13 }
  0x2f   :  { %319 = vmatprep.subr.bf16.mxu1 %v396_v0 }
  0x30   :  { %270 = vmatmul.mubr.msk.f32.vlgmr.msra.gmra.mrb[0].mxu0 %vm60_vm1, %v48_v16 }
  0x32   :  { %321 = vmatpush3.bf16.msra.mxu1 %v320_v17 }
  0x33   :  { %322 = vmatprep.subr.bf16.mxu1 %v396_v0 }
  0x36   :  { %324 = vmatpush3.bf16.msra.mxu1 %v323_v20 }
  0x37   :  { %325 = vmatprep.subr.bf16.mxu1 %v396_v0 }
  0x3a   :  { %327 = vmatpush3.bf16.msra.mxu1 %v326_v23 }
  0x3b   :  { %328 = vmatprep.subr.bf16.mxu1 %v396_v0 }
  0x3e   :  { %330 = vmatpush3.bf16.msra.mxu1 %v329_v26 }
  0x3f   :  { %331 = vmatprep.subr.bf16.mxu1 %v396_v0 }
  0x42   :  { %333 = vmatpush3.bf16.msra.mxu1 %v332_v29 }
  0x43   :  { %334 = vmatprep.subr.bf16.mxu1 %v396_v0 }
  0x46   :  { %336 = vmatpush3.bf16.msra.mxu1 %v335_v32 }
 0x103   :  { %v130_v34 = vpop.f32.mrb[0].mxu0 }
 0x104   :  { %v131_v35 = vadd.f32 %v236_v33, %v130_v34  ;;  %v271_v36 = vpop.f32.mrb[1].mxu0 }
 0x106   :  { %v134_v37 = vmax.f32 %v131_v35, 0.0 }
 0x108   :  { %305 = vmatmul.mubr.f32.vlgmr.msra.gmra.mrb[0].mxu1 %v134_v37 }
 0x1db   :  { %v224_v39 = vpop.f32.mrb[0].mxu1 }
 0x1dc   :  { %v225_v40 = vadd.f32 %v238_v38, %v224_v39  ;;  %v306_v41 = vpop.f32.mrb[1].mxu1 }
 0x1de   :  { %v228_v42 = vmax.f32 %v225_v40, 0.0 }
 0x1e0   :  { %229 = vst [vmem:[%s470_s5] sm:$0xff] %v228_v42 }
 0x1e1   :  { %234 = vsyncpa [#allocation3], 1 }
 0x1e2   :  { %235 = vsyncpa [#allocation5], 1 }

</bundles_post_ra>
